<compile_context>
chip_gen: v5e
topology: v5e:2x2
jax: 0.10.0
libtpu: 0.0.40
codegen_flags: <defaults>
</compile_context>

<pallas_src>
import jax
import jax.numpy as jnp
from jax.experimental import pallas as pl
from jax.experimental.pallas import tpu as pltpu


def _identity_kernel(data_ref, out_ref):
    # Single f32 scalar on the SMEM scalar path (sld -> sst). No vector-path
    # traffic, no VMEM tile, no grid.
    out_ref[0] = data_ref[0]


def myloss_func_forward(data_param: jax.Array) -> jax.Array:
    """Recommended forward: identity on the parameter, zero kernel overhead.

    Matches PyTorch `MylossFunc.forward()` exactly (returns the parameter).
    When this value feeds a larger downstream Pallas loss kernel, pass it to
    that kernel as a scalar-prefetch / SMEM input instead of launching
    anything here.
    """
    return data_param


def myloss_func_forward_pallas(data_param: jax.Array) -> jax.Array:
    """Pallas scaffold variant (placeholder for future real loss math).

    Scalar lives in SMEM for both input and output.  No input/output alias
    (caller keeps ownership of the parameter buffer), no side-effect flag
    (XLA may DCE the call if the result is unused — that is desired).
    """
    return pl.pallas_call(
        _identity_kernel,
        out_shape=jax.ShapeDtypeStruct((1,), data_param.dtype),
        in_specs=[pl.BlockSpec(memory_space=pltpu.MemorySpace.SMEM)],
        out_specs=pl.BlockSpec(memory_space=pltpu.MemorySpace.SMEM),
    )(data_param)


def init_params() -> jax.Array:
    # nn.Parameter(torch.Tensor(1).float().fill_(0.5)) -> shape (1,), value 0.5
    _ = jax.random.PRNGKey(0)  # deterministic constant init; key kept for convention
    return jnp.full((1,), 0.5, dtype=jnp.float32)


if __name__ == "__main__":
    data_param = init_params()

    # Primary (zero-overhead) forward path — this is what a train step uses.
    out_direct = jax.block_until_ready(myloss_func_forward(data_param))

    # Pallas scaffold — run once to validate it compiles and executes on TPU.
    out_kernel = jax.block_until_ready(myloss_func_forward_pallas(data_param))

    assert out_kernel.shape == (1,), f"bad shape {out_kernel.shape}"
    assert out_kernel.dtype == jnp.float32, f"bad dtype {out_kernel.dtype}"
    assert float(out_kernel[0]) == 0.5, f"bad value {out_kernel}"
    assert float(out_direct[0]) == float(out_kernel[0]), "paths disagree"

    # TODO(synk): when real loss math lands, fold this parameter into that
    # kernel as a scalar-prefetch arg and delete the standalone scaffold call.

    print("KERNEL_OK")
</pallas_src>

<mosaic_0001>
module attributes {stable_mosaic.version = 11 : i64} {
  func.func @_identity_kernel(%arg0: memref<1xf32, #tpu.memory_space<smem>>, %arg1: memref<1xf32, #tpu.memory_space<smem>>) attributes {dimension_semantics = [], scalar_prefetch = 0 : i64, scratch_operands = 0 : i64, tpu.core_type = #tpu.core_type<tc>} {
    %c0 = arith.constant 0 : index
    %0 = memref.load %arg0[%c0] : memref<1xf32, #tpu.memory_space<smem>>
    %c0_0 = arith.constant 0 : index
    %1 = memref.load %arg1[%c0_0] : memref<1xf32, #tpu.memory_space<smem>>
    memref.store %0, %arg1[%c0_0] : memref<1xf32, #tpu.memory_space<smem>>
    return
  }
}

</mosaic_0001>

<bundles_post_ra>
// kernel: tpu_custom_call.1
= control target key start
LH: loop header
LB: loop body
LE: loop exit
PB: predicated region body
PF: predicated region fallthrough
CT: control target
= control target key end

     0   :  { %7 = vsyncpa [#allocation4], 0  ;;  %s43_s11 = smov [#allocation3]   ;;  %s60_s0 = inlined_call_operand.<no memory space> [shape: f32[1], index: 0, kind: input, shape index: {}]   ;;  %s61_s1 = inlined_call_operand.hbm [shape: f32[1], index: 1, kind: output, shape index: {}]  }
   0x1   :  { %12 = sst [smem:[#allocation3]] %s60_s0  ;;  %s18_s10 = sshll.u32 %s61_s1, 4  ;;  %s19_s10 = int_to_ptr.hbm [resolvable:$true] %s18_s10 }
   0x2   :  { %21 = dma.smem_to_hbm %s43_s11, 16, %s19_s10, [#allocation4]  }
   0x3   :  { %41 = dma.done.wait [#allocation4], 16  }
   0x4   :  { %42 = vsyncadd [#allocation4], 4294967280 }
   0x5   :  { %26 = sfence }
   0x6   :  { %27 = vsyncpa [#allocation4], 1 }

</bundles_post_ra>
